<compile_context>
chip_gen: v6e
topology: v6e:2x2x1
jax: 0.10.0
libtpu: 0.0.40
codegen_flags: <defaults>
</compile_context>

<pallas_src>
import functools

import jax
import jax.numpy as jnp
from jax.experimental import pallas as pl
from jax.experimental.pallas import tpu as pltpu


def _spatial_gather_kernel(probs_ref, feats_ref, out_ref, *, scale):
    # probs_ref: (1, K, N), feats_ref: (1, TC, N), out_ref: (1, TC, K)
    p = probs_ref[0].astype(jnp.float32)                   # (K, N)
    if scale != 1.0:                                       # static Python branch
        p = p * scale

    # Numerically-stable softmax numerator / denominator over the lane axis.
    m = jnp.max(p, axis=-1, keepdims=True)                 # (K, 1)   XLU
    e = jnp.exp(p - m)                                     # (K, N)   EUP
    denom = jnp.sum(e, axis=-1, keepdims=True)             # (K, 1)   XLU

    f = feats_ref[0]                                       # (TC, N) storage dtype
    # (TC, N) . (K, N)^T -> (TC, K) on the MXU (contract over N); C on M axis.
    ctx = jax.lax.dot_general(
        f, e.astype(f.dtype),
        dimension_numbers=(((1,), (1,)), ((), ())),
        preferred_element_type=jnp.float32,
    )                                                      # (TC, K) f32

    # Fold the softmax normalization into a tiny post-matmul rescale.
    inv = pl.reciprocal(denom, approx=True)                # (K, 1)   EUP
    ctx = ctx * jnp.transpose(inv)                         # broadcast (1, K)
    out_ref[0] = ctx.astype(out_ref.dtype)


def _choose_c_tile(C, N, itemsize, vmem_budget_bytes=20 * 1024 * 1024):
    """Largest C-tile whose double-buffered feats block fits the VMEM budget.

    Returned tile divides C and is a multiple of 8 (or equals C itself).
    """
    cap = vmem_budget_bytes // (2 * N * itemsize)
    if C <= max(cap, 8):
        return C
    tc = min(C, max((cap // 8) * 8, 8))
    while tc > 8 and C % tc != 0:
        tc -= 8
    return tc if C % tc == 0 else C


def spatial_gather(feats, probs, scale=1.0):
    """feats: (B, C, H, W), probs: (B, K, H, W) -> (B, C, K, 1)."""
    B, C, H, W = feats.shape
    Bp, K, Hp, Wp = probs.shape
    assert B == Bp and (H, W) == (Hp, Wp)
    N = H * W

    feats_f = feats.reshape(B, C, N)
    probs_f = probs.reshape(B, K, N)

    TC = _choose_c_tile(C, N, feats_f.dtype.itemsize)
    n_ct = C // TC

    kernel = functools.partial(_spatial_gather_kernel, scale=float(scale))

    out_ck = pl.pallas_call(
        kernel,
        out_shape=jax.ShapeDtypeStruct((B, C, K), feats.dtype),
        grid_spec=pltpu.PrefetchScalarGridSpec(
            num_scalar_prefetch=0,
            grid=(B, n_ct),
            in_specs=[
                # probs: same block for every C-tile -> stays resident across c.
                pl.BlockSpec((1, K, N), lambda b, c: (b, 0, 0)),
                # feats: one (TC, N) slab per grid step (pipelined DMA).
                pl.BlockSpec((1, TC, N), lambda b, c: (b, c, 0)),
            ],
            out_specs=pl.BlockSpec((1, TC, K), lambda b, c: (b, c, 0)),
        ),
        compiler_params=pltpu.CompilerParams(
            dimension_semantics=("parallel", "parallel"),
            vmem_limit_bytes=32 * 1024 * 1024,
        ),
    )(probs_f, feats_f)

    # (B, C, K) -> (B, C, K, 1)  (matches torch .permute(0, 2, 1).unsqueeze(3))
    return out_ck[..., None]


def _reference(feats, probs, scale=1.0):
    B, C, H, W = feats.shape
    K = probs.shape[1]
    N = H * W
    p = jax.nn.softmax(scale * probs.reshape(B, K, N).astype(jnp.float32), axis=-1)
    f = feats.reshape(B, C, N).astype(jnp.float32)
    ctx = jnp.einsum("bkn,bcn->bkc", p, f)
    return jnp.transpose(ctx, (0, 2, 1))[..., None].astype(feats.dtype)


if __name__ == "__main__":
    key = jax.random.PRNGKey(0)
    k1, k2 = jax.random.split(key)

    B, C, K, H, W = 2, 32, 4, 16, 16   # feats channels=32, cls_num=4
    feats = jax.random.normal(k1, (B, C, H, W), dtype=jnp.float32)
    probs = jax.random.normal(k2, (B, K, H, W), dtype=jnp.float32)

    out = spatial_gather(feats, probs, scale=1.0)
    out = jax.block_until_ready(out)

    ref = _reference(feats, probs, scale=1.0)
    assert out.shape == (B, C, K, 1), out.shape
    # approx=True reciprocal + f32 accumulation: slightly looser tolerance.
    assert jnp.allclose(out, ref, atol=1e-3, rtol=1e-3), "mismatch vs reference"

    print("KERNEL_OK")
</pallas_src>

<mosaic_0001>
module attributes {stable_mosaic.version = 11 : i64} {
  func.func @_spatial_gather_kernel(%arg0: i32, %arg1: i32, %arg2: memref<1x4x256xf32, #tpu.memory_space<vmem>>, %arg3: memref<1x32x256xf32, #tpu.memory_space<vmem>>, %arg4: memref<1x32x4xf32, #tpu.memory_space<vmem>>) attributes {dimension_semantics = [#tpu.dimension_semantics<parallel>, #tpu.dimension_semantics<parallel>], iteration_bounds = array<i64: 2, 1>, scalar_prefetch = 0 : i64, scratch_operands = 0 : i64, tpu.core_type = #tpu.core_type<tc>, window_params = [{transform_indices = @transform_0, window_bounds = array<i64: 1, 4, 256>}, {transform_indices = @transform_1, window_bounds = array<i64: 1, 32, 256>}, {transform_indices = @transform_2, window_bounds = array<i64: 1, 32, 4>}]} {
    %c0 = arith.constant 0 : index
    %c0_0 = arith.constant 0 : index
    %c0_1 = arith.constant 0 : index
    %0 = vector.load %arg2[%c0, %c0_0, %c0_1] : memref<1x4x256xf32, #tpu.memory_space<vmem>>, vector<1x4x256xf32>
    %1 = vector.shape_cast %0 : vector<1x4x256xf32> to vector<4x256xf32>
    %cst = arith.constant dense<0xFF800000> : vector<4xf32>
    %2 = vector.multi_reduction <maximumf>, %1, %cst [1] : vector<4x256xf32> to vector<4xf32>
    %3 = vector.shape_cast %2 : vector<4xf32> to vector<4x1xf32>
    %4 = vector.broadcast %3 : vector<4x1xf32> to vector<4x256xf32>
    %5 = arith.subf %1, %4 : vector<4x256xf32>
    %6 = math.exp %5 : vector<4x256xf32>
    %cst_2 = arith.constant dense<0.000000e+00> : vector<4xf32>
    %7 = vector.multi_reduction <add>, %6, %cst_2 [1] : vector<4x256xf32> to vector<4xf32>
    %8 = vector.shape_cast %7 : vector<4xf32> to vector<4x1xf32>
    %c0_3 = arith.constant 0 : index
    %c0_4 = arith.constant 0 : index
    %c0_5 = arith.constant 0 : index
    %9 = vector.load %arg3[%c0_3, %c0_4, %c0_5] : memref<1x32x256xf32, #tpu.memory_space<vmem>>, vector<1x32x256xf32>
    %10 = vector.shape_cast %9 : vector<1x32x256xf32> to vector<32x256xf32>
    %cst_6 = arith.constant dense<0.000000e+00> : vector<32x4xf32>
    %11 = tpu.matmul %10, %6, %cst_6 {dimension_numbers = #tpu.dot_dimension_numbers<[1], [1], [0], [0], [0, 0, 1, 0], [], []>} : vector<32x256xf32>, vector<4x256xf32>, vector<32x4xf32> -> vector<32x4xf32>
    %12 = tpu.reciprocal %8 {approx = true} : vector<4x1xf32> -> vector<4x1xf32>
    %13 = tpu.transpose %12, [1, 0] : vector<4x1xf32> -> vector<1x4xf32>
    %14 = vector.broadcast %13 : vector<1x4xf32> to vector<32x4xf32>
    %15 = arith.mulf %11, %14 : vector<32x4xf32>
    %c0_7 = arith.constant 0 : index
    %c0_8 = arith.constant 0 : index
    %c0_9 = arith.constant 0 : index
    %16 = vector.load %arg4[%c0_7, %c0_8, %c0_9] : memref<1x32x4xf32, #tpu.memory_space<vmem>>, vector<1x32x4xf32>
    %17 = vector.shape_cast %16 : vector<1x32x4xf32> to vector<32x4xf32>
    %18 = vector.shape_cast %15 : vector<32x4xf32> to vector<1x32x4xf32>
    tpu.vector_store %arg4[%c0_7, %c0_8, %c0_9], %18 {strides = array<i32>} : memref<1x32x4xf32, #tpu.memory_space<vmem>>, vector<1x32x4xf32>,
    return
  }
  func.func @transform_0(%arg0: i32, %arg1: i32) -> (i32, i32, i32) {
    %c0_i32 = arith.constant 0 : i32
    %c0_i32_0 = arith.constant 0 : i32
    %c0_i32_1 = arith.constant 0 : i32
    return %arg0, %c0_i32, %c0_i32_0 : i32, i32, i32
  }
  func.func @transform_1(%arg0: i32, %arg1: i32) -> (i32, i32, i32) {
    %c0_i32 = arith.constant 0 : i32
    %c0_i32_0 = arith.constant 0 : i32
    return %arg0, %arg1, %c0_i32 : i32, i32, i32
  }
  func.func @transform_2(%arg0: i32, %arg1: i32) -> (i32, i32, i32) {
    %c0_i32 = arith.constant 0 : i32
    %c0_i32_0 = arith.constant 0 : i32
    return %arg0, %arg1, %c0_i32 : i32, i32, i32
  }
}

</mosaic_0001>

<bundles_post_ra>
// kernel: tpu_custom_call.1
= control target key start
LH: loop header
LB: loop body
LE: loop exit
PB: predicated region body
PF: predicated region fallthrough
CT: control target
= control target key end

     0   :  { %7 = vsyncpa [#allocation3], 0  ;;  %s883_s0 = inlined_call_operand.hbm [shape: f32[2,4,256], index: 0, kind: input, shape index: {}]   ;;  %s884_s1 = inlined_call_operand.hbm [shape: f32[2,32,256], index: 1, kind: input, shape index: {}]   ;;  %s885_s2 = inlined_call_operand.vmem [shape: f32[2,32,4], index: 2, kind: output, shape index: {}]  }
   0x1   :  { %9 = vsyncpa [#allocation3 + $0x1], 0 }
   0x2   :  { %10 = vsyncpa [#allocation5], 0 }
   0x3   :  { %12 = vsyncpa [#allocation5 + $0x1], 0  ;;  %s741_s9 = smov 0   ;;  %s743_s10 = smov 0  }
   0x4   :  { %s745_s11 = smov 0   ;;  %s747_s12 = smov 0  }
   0x5   :  { %s749_s13 = smov 0   ;;  %s751_s14 = smov 0  }
   0x6 LB: > { %s518_s15 = sadd.s32 4294967295, %s719_s14   ;;  %s30_s16 = sadd.s32 1, %s715_s13  ;;  %s719_s14 = sphi %s751_s14, %s18_s14   ;;  %s715_s13 = sphi %s749_s13, %s894_s13   ;;  %s711_s12 = sphi %s747_s12, %s893_s12   ;;  %s707_s11 = sphi %s745_s11, %s892_s11   ;;  %s703_s10 = sphi %s743_s10, %s891_s10   ;;  %s699_s9 = sphi %s741_s9, %s890_s9  }
   0x7   : > { %p32_p0 = scmp.ge.s32.totalorder %s30_s16, 2  ;;  %s37_s17 = sadd.s32 1, %s707_s11 }
   0x8   : > { %p44_p1 = scmp.ne.s32.totalorder %s707_s11, %s703_s10  ;;  %p45_p2 = scmp.eq.s32.totalorder %s719_s14, 0 }
   0x9   : > { %s896_s16 = smov (%p32_p0, %s30_s16), 0  ;;  %p50_p4 = scmp.ne.s32.totalorder %s703_s10, %s699_s9 }
   0xa   : > { %p777_p3 = por %p45_p2, %p44_p1  ;;  %s34_s19 = ssub.s32 %s715_s13, %s896_s16 }
   0xb   : > { %p51_p5 = scmp.eq.s32.totalorder %s518_s15, 0  ;;  %p35_p6 = scmp.eq.s32.totalorder %s34_s19, 0 }
   0xc   : > { %p551_p8 = scmp.lt.s32.totalorder %s719_s14, 2  ;;  %s793_s22 = sand.u32 1, %s707_s11  }
   0xd   : > { %p784_p7 = por %p51_p5, %p50_p4  ;;  %s535_s23 = sshll.u32 %s715_s13, 7 }
   0xe   : > { %s790_s21 = scalar_select %p35_p6, %s707_s11, %s37_s17  }
   0xf   : > { %s522_s24 = sshll.u32 %s793_s22, 3  ;;  %s140_s27 = scalar_lea.hbm %s883_s0, %s535_s23 }
  0x10   : > { %s134_s28 = scalar_lea.vmem [#allocation2], %s522_s24  ;;  %p802_p9 = pnand %p551_p8, %p777_p3 }
  0x11   : > { %s142_s29 = sshll.u32 %s134_s28, 4  ;;  %p528_p10 = scmp.ge.s32.totalorder %s719_s14, 1  ;;  %s143_s29 = int_to_ptr.vmem [resolvable:$true] %s142_s29 }
  0x12   : > { %p171_p11 = scmp.lt.s32.totalorder %s719_s14, 3  ;;  %s131_s3 = scalar_lea.sflag [#allocation3], %s793_s22 }
  0x13   : > { %p611_p12 = pneg %p802_p9  ;;  %s622_s4 = scalar_lea.vmem %s143_s29, 128 }
  0x14   : > { %p623_p13 = scmp.ne.s32.totalorder %s143_s29, %s622_s4  ;;  %s721_s5 = smov [#allocation2]  }
  0x15   : > { %s627_s6 = sshll.u32 %s721_s5, 4  ;;  %s628_s6 = int_to_ptr.vmem [resolvable:$false] %s627_s6 }
  0x16   : > { %p625_p0 = pnand %p623_p13, %p611_p12  ;;  %s629_s7 = scalar_lea.vmem %s628_s6, 256 }
  0x17   : > { %p630_p2 = scmp.lt.s32.totalorder %s143_s29, %s628_s6  ;;  %p631_p3 = scmp.lt.s32.totalorder %s629_s7, %s622_s4 }
  0x18   : > { %p626_p1 = pneg %p625_p0 }
  0x19   : > { %p632_p4 = por %p631_p3, %p630_p2 }
  0x1b   : > { %p633_p5 = pnand %p632_p4, %p626_p1 }
  0x1d   : > { %636 = shalt.err (!%p633_p5)
}
  0x1e   : > { %547 = dma.hbm_to_vmem [thread:$0]  (!%p802_p9), %s140_s27, 128, %s143_s29, %s131_s3  }
  0x1f   : > { %p820_p6 = pnand %p528_p10, %p171_p11  ;;  %s525_s9 = sshll.u32 %s793_s22, 6 }
  0x20   : > { %s536_s15 = sshll.u32 %s715_s13, 10  ;;  %s153_s23 = scalar_lea.vmem [#allocation4], %s525_s9 }
  0x21   : > { %s162_s19 = scalar_lea.hbm %s884_s1, %s536_s15  ;;  %s163_s24 = sshll.u32 %s153_s23, 4  ;;  %s164_s24 = int_to_ptr.vmem [resolvable:$true] %s163_s24 }
  0x22   : > { %s150_s25 = scalar_lea.sflag [#allocation5], %s793_s22  ;;  %s650_s26 = scalar_lea.vmem %s164_s24, 1024 }
  0x23   : > { %p651_p8 = scmp.ne.s32.totalorder %s164_s24, %s650_s26  ;;  %s722_s27 = smov [#allocation4]  }
  0x24   : > { %s655_s28 = sshll.u32 %s722_s27, 4  ;;  %s656_s28 = int_to_ptr.vmem [resolvable:$false] %s655_s28 }
  0x25   : > { %p653_p13 = pnand %p651_p8, %p611_p12  ;;  %s657_s29 = scalar_lea.vmem %s656_s28, 2048 }
  0x26   : > { %p658_p10 = scmp.lt.s32.totalorder %s164_s24, %s656_s28  ;;  %p659_p11 = scmp.lt.s32.totalorder %s657_s29, %s650_s26 }
  0x27   : > { %p654_p0 = pneg %p653_p13 }
  0x28   : > { %p660_p1 = por %p659_p11, %p658_p10 }
  0x2a   : > { %p661_p2 = pnand %p660_p1, %p654_p0 }
  0x2c   : > { %664 = shalt.err (!%p661_p2)
}
  0x2d   : > { %s723_s3 = smov 256   ;;  %s724_s4 = smov 16  }
  0x2e   : > { %550 = dma.hbm_to_vmem [thread:$0]  (!%p802_p9), %s162_s19, 1024, %s164_s24, %s150_s25, %s723_s3, %s723_s3, %s724_s4  }
  0x2f   : > { %175 = sbr.rel (%p820_p6) target bundleno = 508 (0x1fc), region = 28  ;;  %s177_s22 = sand.u32 (!%p820_p6), 1, %s703_s10  }
  0x30   : > { %s529_s5 = sshll.u32 (!%p820_p6), %s177_s22, 3  ;;  %s178_s6 = scalar_lea.sflag (!%p820_p6), [#allocation3], %s177_s22 }
  0x31   : > { %s181_s7 = scalar_lea.vmem (!%p820_p6), [#allocation2], %s529_s5 }
  0x34   : > { %690 = dma.done.wait (%p784_p7), %s178_s6, 128  }
  0x35   : > { %692 = vsyncadd (%p784_p7), %s178_s6, 4294967168  ;;  %s530_s9 = sshll.u32 %s177_s22, 6  ;;  %s187_s15 = scalar_lea.sflag [#allocation5], %s177_s22 }
  0x36   : > { %s842_s17 = scalar_lea.vmem [#allocation4], %s530_s9 }
  0x37   : > { %694 = dma.done.wait (%p784_p7), %s187_s15, 1024  }
  0x38   : > { %696 = vsyncadd (%p784_p7), %s187_s15, 4294966272  ;;  %vm235_vm0 = vcmask 1043456   ;;  %v231_v0 = vld [vmem:[%s181_s7] sm:$0xff]  ;;  %v262_v5 = vld [vmem:[%s842_s17 + $0x8] sm:$0xff]  ;;  %v725_v7 = vmov 839922192   ;;  %v245_v9 = vlaneseq }
  0x39   : > { %v233_v1 = vcombine.high %v231_v0, %v231_v0  ;;  %v236_v2 = vsel %vm235_vm0, %v231_v0, -inf  ;;  %v266_v6 = vld [vmem:[%s842_s17 + $0x28] sm:$0xff]  ;;  %333 = vmatprep.mubr.f32.mxu0 %v262_v5  ;;  %v243_v8 = vunpack.c.l.s4 %v725_v7  ;;  %v261_v22 = vld [vmem:[%s842_s17] sm:$0xff]  ;;  %v264_v24 = vld [vmem:[%s842_s17 + $0x18] sm:$0xff]  ;;  %p222_p7 = scmp.lt.s32.totalorder %s711_s12, 1  ;;  %vm395_vm1 = vcmask 31744  }
  0x3a   : > { %343 = vmatprep.mubr.f32.mxu1 %v266_v6  ;;  %v246_v11 = vshrl.u32 %v245_v9, 7  ;;  %v265_v23 = vld [vmem:[%s842_s17 + $0x20] sm:$0xff]  ;;  %v268_v25 = vld [vmem:[%s842_s17 + $0x38] sm:$0xff]  ;;  %v263_v26 = vld [vmem:[%s842_s17 + $0x10] sm:$0xff] }
  0x3b   : > { %v237_v3 = vsel %vm235_vm0, %v233_v1, -inf  ;;  %v244_v10 = vunpack.c.0.s8 %v243_v8  ;;  %v267_v27 = vld [vmem:[%s842_s17 + $0x30] sm:$0xff]  ;;  %s898_s12 = smov (!%p222_p7, %s711_s12), 1 }
  0x3c   : > { %v238_v4 = vmax.f32 %v236_v2, %v237_v3  ;;  %v389_v38 = vsub.s32 0, %v246_v11  ;;  %s537_s20 = sshll.u32 %s898_s12, 5 }
  0x3d   : > { %v247_v12 = vsub.s32 %v244_v10, %v246_v11  ;;  %s229_s18 = scalar_lea.vmem %s885_s2, %s537_s20 }
  0x3e   : > { %239 = vmax.xlane.f32.xlu0 %v238_v4 }
  0xc7   : > { %v240_v13 = vpop.xlane.xlu0 %239 }
  0xc8   : > { %v248_v14 = vrot.slane %v240_v13, %v247_v12 }
  0xca   : > { %v250_v15 = vsub.f32 %v231_v0, %v248_v14 }
  0xcc   : > { %v251_v16 = vmul.f32 1.442695, %v250_v15 }
  0xce   : > { %605 = vpow2.f32 %v251_v16 }
  0xdb   : > { %v606_v17 = vpop.eup %605 }
  0xdc   : > { %v254_v18 = vcombine.high %v606_v17, %v606_v17  ;;  %v256_v19 = vsel %vm235_vm0, %v606_v17, 0.0 }
  0xde   : > { %299 = vmatprep.subr.mxu0 %v254_v18  ;;  %538 = vmatprep.subr.mxu1 %v254_v18  ;;  %v257_v20 = vsel %vm235_vm0, %v254_v18, 0.0 }
  0xdf   : > { %300 = vmatpush1.xpose.msra.mxu0 %v606_v17  ;;  %539 = vmatpush1.xpose.msra.mxu1 %v606_v17  ;;  %v258_v21 = vadd.f32 %v257_v20, %v256_v19 }
  0xe1   : > { %259 = vadd.xlane.f32.xlu0 %v258_v21 }
  0xe2   : > { %334 = vmatmul.mubr.f32.vlgmr.msra.gmra.mxu0 %v261_v22  ;;  %344 = vmatmul.mubr.f32.vlgmr.msra.gmra.mxu1 %v265_v23 }
  0xe3   : > { %338 = vmatprep.mubr.f32.mxu0 %v264_v24  ;;  %348 = vmatprep.mubr.f32.mxu1 %v268_v25 }
  0xe6   : > { %339 = vmatmul.mubr.f32.gmra.mxu0 %v263_v26  ;;  %349 = vmatmul.mubr.f32.gmra.mxu1 %v267_v27 }
 0x16a   : > { %v260_v28 = vpop.xlane.xlu0 %259 }
 0x16b   : > { %607 = vrcp.f32 %v260_v28 }
 0x178   : > { %v608_v29 = vpop.eup %607 }
 0x179   : > { %355 = vxpose.xlu1.b32.start.end [1/1] (short) (narrow) %v608_v29, 8 }
 0x1a2   : > { %v335_v30 = vpop.f32.mrf.mxu0  ;;  %v345_v31 = vpop.f32.mrf.mxu1 }
 0x1a4   : > { %v337_v32 = vpop.f32.mrf.mxu0  ;;  %v347_v33 = vpop.f32.mrf.mxu1 }
 0x1a6   : > { %v340_v34 = vpop.f32.mrf.mxu0  ;;  %v350_v35 = vpop.f32.mrf.mxu1 }
 0x1a8   : > { %v342_v36 = vpop.f32.mrf.mxu0  ;;  %v352_v37 = vpop.f32.mrf.mxu1 }
 0x1f5   : > { %v371_v39 = vpop.trf.xlu1 }
 0x1f6   : > { %v390_v40 = vrot.slane %v371_v39, %v389_v38 }
 0x1f8   : > { %v391_v41 = vmul.f32 %v390_v40, %v335_v30  ;;  %v392_v42 = vmul.f32 %v390_v40, %v340_v34  ;;  %v393_v43 = vmul.f32 %v390_v40, %v345_v31  ;;  %v394_v44 = vmul.f32 %v390_v40, %v350_v35 }
 0x1fa   : > { %396 = vst.msk [vmem:[%s229_s18] sm:$0xff] %vm395_vm1, %v391_v41  ;;  %397 = vst.msk [vmem:[%s229_s18 + $0x8] sm:$0xff] %vm395_vm1, %v392_v42 }
 0x1fb   : > { %398 = vst.msk [vmem:[%s229_s18 + $0x10] sm:$0xff] %vm395_vm1, %v393_v43  ;;  %399 = vst.msk [vmem:[%s229_s18 + $0x18] sm:$0xff] %vm395_vm1, %v394_v44 }
 0x1fc PF: > { %s18_s14 = sadd.s32 1, %s719_s14   ;;  %s890_s9 = smov %s703_s10 }
 0x1fd   : > { %p15_p9 = scmp.ge.s32.totalorder %s18_s14, 4   ;;  %s891_s10 = smov %s707_s11 }
 0x1fe   : > { %s892_s11 = smov %s790_s21  ;;  %s893_s12 = smov %s715_s13 }
 0x1ff   : > { %s894_s13 = smov %s896_s16  ;;  %17 = sbr.rel (!%p15_p9) target bundleno = 6 (0x6), region = 81 }
 0x204   :  { %430 = vsyncpa [#allocation3], 1 }
 0x205   :  { %432 = vsyncpa [#allocation3 + $0x1], 1 }
 0x206   :  { %433 = vsyncpa [#allocation5], 1 }
 0x207   :  { %435 = vsyncpa [#allocation5 + $0x1], 1 }

</bundles_post_ra>
